<compile_context>
chip_gen: v7x
topology: tpu7x:2x2x1
jax: 0.10.0
libtpu: 0.0.40
codegen_flags: <defaults>
</compile_context>

<pallas_src>
import functools

import jax
import jax.numpy as jnp
from jax import lax
from jax.experimental import pallas as pl
from jax.experimental.pallas import tpu as pltpu


def _round_up(a, m):
    return ((a + m - 1) // m) * m


def _leaky_relu(v, slope):
    return jnp.where(v >= 0, v, v * slope)


def _resblock_kernel(x_ref, halo_ref, w1_ref, b1_ref, w2_ref, b2_ref, o_ref, *,
                     K, d1, d2, pad1, pad2, hwp, t_tile, t_total, neg_slope):
    C = x_ref.shape[1]
    cdt = x_ref.dtype                    # MXU operand dtype (bf16 stays bf16)
    tt = t_tile
    T1 = tt + 2 * pad2                   # stage-1 columns needed by conv-2
    halo = pad1 + pad2

    # extended window: [left halo | tile | right halo] -> (C, tt + 2*hwp)
    hb = halo_ref[0, 0]
    x_ext = jnp.concatenate([hb[:, :hwp], x_ref[0], hb[:, hwp:]], axis=-1)

    # ---- stage 1: leaky_relu -> conv1 (K per-tap MXU matmuls) + bias + res --
    act1 = _leaky_relu(x_ext, neg_slope)
    res1 = x_ext[:, hwp - pad2:hwp - pad2 + T1].astype(jnp.float32)
    acc1 = res1 + b1_ref[...]                               # f32 epilogue bias
    base = hwp - halo
    for k in range(K):                                      # static unroll
        s = base + k * d1
        acc1 = acc1 + jnp.dot(w1_ref[k], act1[:, s:s + T1],
                              preferred_element_type=jnp.float32)

    # Zero stage-1 columns outside [0, T) so conv-2 sees torch-style zero
    # padding. Only boundary tiles pay for the mask.
    j = pl.program_id(1)
    needs_mask = (j == 0) | ((j + 1) * tt + pad2 > t_total)

    def _mask(s1):
        gcol = j * tt - pad2 + lax.broadcasted_iota(jnp.int32, (C, T1), 1)
        return jnp.where((gcol >= 0) & (gcol < t_total), s1, 0.0)

    stage1 = lax.cond(needs_mask, _mask, lambda s1: s1, acc1)   # (C, T1) f32

    # ---- stage 2: leaky_relu -> conv2 (K per-tap MXU matmuls) + bias + res --
    act2 = _leaky_relu(stage1, neg_slope).astype(cdt)
    acc2 = stage1[:, pad2:pad2 + tt] + b2_ref[...]
    for k in range(K):
        s = k * d2
        acc2 = acc2 + jnp.dot(w2_ref[k], act2[:, s:s + tt],
                              preferred_element_type=jnp.float32)

    o_ref[0] = acc2.astype(o_ref.dtype)


def resblock_forward(x, w1, b1, w2, b2, *, kernel_size, dilations,
                     negative_slope=0.1, time_tile=2048):
    """x: (B, C, T); w*: (C_out, C_in, K) torch layout; b*: (C_out,)."""
    B, C, T = x.shape
    C_out, C_in, K = w1.shape
    assert C_out == C_in == C, "residual add requires in/out channels == C"
    assert K == kernel_size
    d1, d2 = dilations
    # 'same' padding only when d*(K-1) is even (matches torch usage with odd K)
    assert (K - 1) * d1 % 2 == 0 and (K - 1) * d2 % 2 == 0
    pad1 = ((K - 1) * d1) // 2
    pad2 = ((K - 1) * d2) // 2
    halo = pad1 + pad2                       # compound halo of the chained convs
    hwp = max(128, _round_up(halo, 128))     # lane-aligned halo width per side

    cdt = x.dtype
    ein = jnp.dtype(cdt).itemsize

    # ---- generation-aware VMEM budget ---------------------------------------
    try:
        vmem_phys = int(pltpu.get_tpu_info().vmem_capacity_bytes)
    except Exception:                        # pragma: no cover - conservative
        vmem_phys = 64 * 2 ** 20             # assume v7x-sized VMEM
    budget = (vmem_phys * 5) // 8

    def est_vmem(tt_):
        t1 = tt_ + 2 * pad2
        w = tt_ + 2 * hwp
        blocks = 2 * (C * tt_ * ein          # x tile (double buffered)
                      + C * 2 * hwp * ein    # halo tile
                      + C * tt_ * ein)       # out tile
        weights = 2 * (2 * K * C * C * ein + 2 * C * 4)
        temps = (2 * C * w * ein             # x_ext + act1
                 + 2 * C * t1 * 4            # stage1 + out accumulator (f32)
                 + 3 * C * t1 * ein)         # act2 + live shifted operands
        return blocks + weights + temps

    # ---- time tile: multiple of 128, >= hwp, fits VMEM budget ---------------
    tt = min(int(time_tile), _round_up(T, 128))
    tt = max(128, (tt // 128) * 128)
    tt = max(tt, hwp)
    while tt - 128 >= max(128, hwp) and est_vmem(tt) > budget:
        tt -= 128
    n_t = -(-T // tt)
    # v7x has 2 TensorCores: keep at least 2 parallel grid steps when possible.
    if B * n_t < 2:
        tt_half = max(max(128, hwp), _round_up(-(-T // 2), 128))
        if tt_half < tt:
            tt = tt_half
            n_t = -(-T // tt)
    Tm = n_t * tt

    # ---- wrapper-side layout: padded main stream + lane-aligned halo stream -
    xm = x if Tm == T else jnp.pad(x, ((0, 0), (0, 0), (0, Tm - T)))
    xz = jnp.pad(xm, ((0, 0), (0, 0), (hwp, hwp)))          # zero halo fill
    lefts = xz[:, :, :Tm].reshape(B, C, n_t, tt)[..., :hwp]
    rights = xz[:, :, 2 * hwp:].reshape(B, C, n_t, tt)[..., tt - hwp:]
    halos = jnp.transpose(jnp.concatenate([lefts, rights], axis=-1),
                          (0, 2, 1, 3))                      # (B, n_t, C, 2*hwp)

    w1s = jnp.transpose(w1, (2, 0, 1)).astype(cdt)           # (K, C, C)
    w2s = jnp.transpose(w2, (2, 0, 1)).astype(cdt)
    b1f = b1.reshape(C, 1).astype(jnp.float32)
    b2f = b2.reshape(C, 1).astype(jnp.float32)

    vmem_limit = int(min(vmem_phys * 3 // 4,
                         max(2 * est_vmem(tt), 16 * 2 ** 20)))

    kern = functools.partial(
        _resblock_kernel, K=K, d1=d1, d2=d2, pad1=pad1, pad2=pad2,
        hwp=hwp, t_tile=tt, t_total=T, neg_slope=negative_slope)

    out = pl.pallas_call(
        kern,
        out_shape=jax.ShapeDtypeStruct((B, C, Tm), x.dtype),
        grid=(B, n_t),
        in_specs=[
            pl.BlockSpec((1, C, tt), lambda b, j: (b, 0, j)),
            pl.BlockSpec((1, 1, C, 2 * hwp), lambda b, j: (b, j, 0, 0)),
            pl.BlockSpec((K, C, C), lambda b, j: (0, 0, 0)),
            pl.BlockSpec((C, 1), lambda b, j: (0, 0)),
            pl.BlockSpec((K, C, C), lambda b, j: (0, 0, 0)),
            pl.BlockSpec((C, 1), lambda b, j: (0, 0)),
        ],
        out_specs=pl.BlockSpec((1, C, tt), lambda b, j: (b, 0, j)),
        compiler_params=pltpu.CompilerParams(
            dimension_semantics=("parallel", "parallel"),
            vmem_limit_bytes=vmem_limit),
    )(xm, halos, w1s, b1f, w2s, b2f)

    return out if Tm == T else out[:, :, :T]


def resblock_reference(x, w1, b1, w2, b2, *, kernel_size, dilations,
                       negative_slope=0.1):
    """Plain-JAX reference matching torch Conv1d (NCL) semantics."""
    def conv(a, w, b, dil):
        p = ((kernel_size - 1) * dil) // 2
        y = lax.conv_general_dilated(
            a, w, window_strides=(1,), padding=[(p, p)], rhs_dilation=(dil,),
            dimension_numbers=("NCH", "OIH", "NCH"))
        return y + b[None, :, None]

    lrelu = lambda v: jnp.where(v >= 0, v, negative_slope * v)
    s1 = x + conv(lrelu(x), w1, b1, dilations[0])
    s2 = s1 + conv(lrelu(s1), w2, b2, dilations[1])
    return s2


if __name__ == "__main__":
    def run_case(key, B, C, T, kernel_size, dilations, time_tile):
        kx, kw1, kb1, kw2, kb2 = jax.random.split(key, 5)
        x = jax.random.normal(kx, (B, C, T), dtype=jnp.float32)
        fan_in = C * kernel_size
        bound = 1.0 / (fan_in ** 0.5)
        w1 = jax.random.uniform(kw1, (C, C, kernel_size), jnp.float32, -bound, bound)
        b1 = jax.random.uniform(kb1, (C,), jnp.float32, -bound, bound)
        w2 = jax.random.uniform(kw2, (C, C, kernel_size), jnp.float32, -bound, bound)
        b2 = jax.random.uniform(kb2, (C,), jnp.float32, -bound, bound)

        out = resblock_forward(x, w1, b1, w2, b2, kernel_size=kernel_size,
                               dilations=dilations, time_tile=time_tile)
        out = jax.block_until_ready(out)
        ref = resblock_reference(x, w1, b1, w2, b2, kernel_size=kernel_size,
                                 dilations=dilations)
        ref = jax.block_until_ready(ref)

        assert out.shape == (B, C, T)
        err = float(jnp.max(jnp.abs(out - ref)))
        assert jnp.allclose(out, ref, atol=5e-4, rtol=5e-4), (
            f"mismatch: max abs err {err}")

    key = jax.random.PRNGKey(0)
    k1, k2, k3 = jax.random.split(key, 3)
    # tiny module-consistent shapes (single padded tile)
    run_case(k1, B=2, C=4, T=16, kernel_size=3, dilations=(1, 3), time_tile=2048)
    # exact multi-tile case: time tiling + aligned halo stream + boundary mask
    run_case(k2, B=2, C=8, T=1024, kernel_size=3, dilations=(2, 6), time_tile=512)
    # ragged length + wider kernel: cdiv tiling, pad/slice, gated masking
    run_case(k3, B=1, C=8, T=1000, kernel_size=5, dilations=(1, 3), time_tile=384)
    print("KERNEL_OK")
</pallas_src>

<mosaic_0001>
module attributes {stable_mosaic.version = 11 : i64} {
  func.func @_resblock_kernel(%arg0: i32, %arg1: i32, %arg2: memref<1x4x128xf32, #tpu.memory_space<vmem>>, %arg3: memref<1x1x4x256xf32, #tpu.memory_space<vmem>>, %arg4: memref<3x4x4xf32, #tpu.memory_space<vmem>>, %arg5: memref<4x1xf32, #tpu.memory_space<vmem>>, %arg6: memref<3x4x4xf32, #tpu.memory_space<vmem>>, %arg7: memref<4x1xf32, #tpu.memory_space<vmem>>, %arg8: memref<1x4x128xf32, #tpu.memory_space<vmem>>) attributes {dimension_semantics = [#tpu.dimension_semantics<parallel>, #tpu.dimension_semantics<parallel>], iteration_bounds = array<i64: 2, 1>, scalar_prefetch = 0 : i64, scratch_operands = 0 : i64, tpu.core_type = #tpu.core_type<tc>, window_params = [{transform_indices = @transform_0, window_bounds = array<i64: 1, 4, 128>}, {transform_indices = @transform_1, window_bounds = array<i64: 1, 1, 4, 256>}, {pipeline_mode = #tpu.pipeline_mode<synchronous>, transform_indices = @transform_2, window_bounds = array<i64: 3, 4, 4>}, {pipeline_mode = #tpu.pipeline_mode<synchronous>, transform_indices = @transform_3, window_bounds = array<i64: 4, 1>}, {pipeline_mode = #tpu.pipeline_mode<synchronous>, transform_indices = @transform_4, window_bounds = array<i64: 3, 4, 4>}, {pipeline_mode = #tpu.pipeline_mode<synchronous>, transform_indices = @transform_5, window_bounds = array<i64: 4, 1>}, {transform_indices = @transform_6, window_bounds = array<i64: 1, 4, 128>}]} {
    %c0 = arith.constant 0 : index
    %c0_0 = arith.constant 0 : index
    %c0_1 = arith.constant 0 : index
    %c0_2 = arith.constant 0 : index
    %0 = vector.load %arg3[%c0, %c0_0, %c0_1, %c0_2] : memref<1x1x4x256xf32, #tpu.memory_space<vmem>>, vector<1x1x4x256xf32>
    %1 = vector.shape_cast %0 : vector<1x1x4x256xf32> to vector<4x256xf32>
    %2 = vector.extract_strided_slice %1 {offsets = [0, 0], sizes = [4, 128], strides = [1, 1]} : vector<4x256xf32> to vector<4x128xf32>
    %c0_3 = arith.constant 0 : index
    %c0_4 = arith.constant 0 : index
    %c0_5 = arith.constant 0 : index
    %3 = vector.load %arg2[%c0_3, %c0_4, %c0_5] : memref<1x4x128xf32, #tpu.memory_space<vmem>>, vector<1x4x128xf32>
    %4 = vector.shape_cast %3 : vector<1x4x128xf32> to vector<4x128xf32>
    %5 = vector.extract_strided_slice %1 {offsets = [0, 128], sizes = [4, 128], strides = [1, 1]} : vector<4x256xf32> to vector<4x128xf32>
    %6 = tpu.concatenate %2, %4, %5 in 1 : vector<4x128xf32>, vector<4x128xf32>, vector<4x128xf32> -> vector<4x384xf32>
    %cst = arith.constant 0.000000e+00 : f32
    %7 = vector.broadcast %cst : f32 to vector<4x384xf32>
    %8 = arith.cmpf oge, %6, %7 : vector<4x384xf32>
    %cst_6 = arith.constant 1.000000e-01 : f32
    %9 = vector.broadcast %cst_6 : f32 to vector<4x384xf32>
    %10 = arith.mulf %6, %9 : vector<4x384xf32>
    %11 = arith.select %8, %6, %10 : vector<4x384xi1>, vector<4x384xf32>
    %12 = vector.extract_strided_slice %6 {offsets = [0, 125], sizes = [4, 134], strides = [1, 1]} : vector<4x384xf32> to vector<4x134xf32>
    %c0_7 = arith.constant 0 : index
    %c0_8 = arith.constant 0 : index
    %13 = vector.load %arg5[%c0_7, %c0_8] : memref<4x1xf32, #tpu.memory_space<vmem>>, vector<4x1xf32>
    %14 = vector.broadcast %13 : vector<4x1xf32> to vector<4x134xf32>
    %15 = arith.addf %12, %14 : vector<4x134xf32>
    %c0_9 = arith.constant 0 : index
    %c0_10 = arith.constant 0 : index
    %c0_11 = arith.constant 0 : index
    %16 = vector.load %arg4[%c0_9, %c0_10, %c0_11] : memref<3x4x4xf32, #tpu.memory_space<vmem>>, vector<1x4x4xf32>
    %17 = vector.shape_cast %16 : vector<1x4x4xf32> to vector<4x4xf32>
    %18 = vector.extract_strided_slice %11 {offsets = [0, 124], sizes = [4, 134], strides = [1, 1]} : vector<4x384xf32> to vector<4x134xf32>
    %cst_12 = arith.constant dense<0.000000e+00> : vector<4x134xf32>
    %19 = tpu.matmul %17, %18, %cst_12 {dimension_numbers = #tpu.dot_dimension_numbers<[1], [0], [0], [1], [0, 0, 1, 1], [], []>} : vector<4x4xf32>, vector<4x134xf32>, vector<4x134xf32> -> vector<4x134xf32>
    %20 = arith.addf %15, %19 : vector<4x134xf32>
    %c1 = arith.constant 1 : index
    %c0_13 = arith.constant 0 : index
    %c0_14 = arith.constant 0 : index
    %21 = vector.load %arg4[%c1, %c0_13, %c0_14] : memref<3x4x4xf32, #tpu.memory_space<vmem>>, vector<1x4x4xf32>
    %22 = vector.shape_cast %21 : vector<1x4x4xf32> to vector<4x4xf32>
    %23 = vector.extract_strided_slice %11 {offsets = [0, 125], sizes = [4, 134], strides = [1, 1]} : vector<4x384xf32> to vector<4x134xf32>
    %cst_15 = arith.constant dense<0.000000e+00> : vector<4x134xf32>
    %24 = tpu.matmul %22, %23, %cst_15 {dimension_numbers = #tpu.dot_dimension_numbers<[1], [0], [0], [1], [0, 0, 1, 1], [], []>} : vector<4x4xf32>, vector<4x134xf32>, vector<4x134xf32> -> vector<4x134xf32>
    %25 = arith.addf %20, %24 : vector<4x134xf32>
    %c2 = arith.constant 2 : index
    %c0_16 = arith.constant 0 : index
    %c0_17 = arith.constant 0 : index
    %26 = vector.load %arg4[%c2, %c0_16, %c0_17] : memref<3x4x4xf32, #tpu.memory_space<vmem>>, vector<1x4x4xf32>
    %27 = vector.shape_cast %26 : vector<1x4x4xf32> to vector<4x4xf32>
    %28 = vector.extract_strided_slice %11 {offsets = [0, 126], sizes = [4, 134], strides = [1, 1]} : vector<4x384xf32> to vector<4x134xf32>
    %cst_18 = arith.constant dense<0.000000e+00> : vector<4x134xf32>
    %29 = tpu.matmul %27, %28, %cst_18 {dimension_numbers = #tpu.dot_dimension_numbers<[1], [0], [0], [1], [0, 0, 1, 1], [], []>} : vector<4x4xf32>, vector<4x134xf32>, vector<4x134xf32> -> vector<4x134xf32>
    %30 = arith.addf %25, %29 : vector<4x134xf32>
    %c0_i32 = arith.constant 0 : i32
    %31 = arith.cmpi eq, %arg1, %c0_i32 : i32
    %c1_i32 = arith.constant 1 : i32
    %32 = arith.addi %arg1, %c1_i32 : i32
    %c128_i32 = arith.constant 128 : i32
    %33 = arith.muli %32, %c128_i32 : i32
    %c3_i32 = arith.constant 3 : i32
    %34 = arith.addi %33, %c3_i32 : i32
    %c16_i32 = arith.constant 16 : i32
    %35 = arith.cmpi sgt, %34, %c16_i32 : i32
    %36 = arith.ori %31, %35 : i1
    %37 = arith.extui %36 : i1 to i32
    %c0_i32_19 = arith.constant 0 : i32
    %38 = arith.cmpi ne, %37, %c0_i32_19 : i32
    %39 = scf.if %38 -> (vector<4x134xf32>) {
      %c128_i32_39 = arith.constant 128 : i32
      %67 = arith.muli %arg1, %c128_i32_39 : i32
      %c3_i32_40 = arith.constant 3 : i32
      %68 = arith.subi %67, %c3_i32_40 : i32
      %69 = tpu.iota {dimensions = array<i32: 1>} : vector<4x134xi32>
      %70 = vector.broadcast %68 : i32 to vector<4x134xi32>
      %71 = arith.addi %70, %69 : vector<4x134xi32>
      %c0_i32_41 = arith.constant 0 : i32
      %72 = vector.broadcast %c0_i32_41 : i32 to vector<4x134xi32>
      %73 = arith.cmpi sge, %71, %72 : vector<4x134xi32>
      %c16_i32_42 = arith.constant 16 : i32
      %74 = vector.broadcast %c16_i32_42 : i32 to vector<4x134xi32>
      %75 = arith.cmpi slt, %71, %74 : vector<4x134xi32>
      %76 = arith.andi %73, %75 : vector<4x134xi1>
      %cst_43 = arith.constant 0.000000e+00 : f32
      %77 = vector.broadcast %cst_43 : f32 to vector<4x134xf32>
      %78 = arith.select %76, %30, %77 : vector<4x134xi1>, vector<4x134xf32>
      scf.yield %78 : vector<4x134xf32>
    } else {
      scf.yield %30 : vector<4x134xf32>
    }
    %cst_20 = arith.constant 0.000000e+00 : f32
    %40 = vector.broadcast %cst_20 : f32 to vector<4x134xf32>
    %41 = arith.cmpf oge, %39, %40 : vector<4x134xf32>
    %cst_21 = arith.constant 1.000000e-01 : f32
    %42 = vector.broadcast %cst_21 : f32 to vector<4x134xf32>
    %43 = arith.mulf %39, %42 : vector<4x134xf32>
    %44 = arith.select %41, %39, %43 : vector<4x134xi1>, vector<4x134xf32>
    %45 = vector.extract_strided_slice %39 {offsets = [0, 3], sizes = [4, 128], strides = [1, 1]} : vector<4x134xf32> to vector<4x128xf32>
    %c0_22 = arith.constant 0 : index
    %c0_23 = arith.constant 0 : index
    %46 = vector.load %arg7[%c0_22, %c0_23] : memref<4x1xf32, #tpu.memory_space<vmem>>, vector<4x1xf32>
    %47 = vector.broadcast %46 : vector<4x1xf32> to vector<4x128xf32>
    %48 = arith.addf %45, %47 : vector<4x128xf32>
    %c0_24 = arith.constant 0 : index
    %c0_25 = arith.constant 0 : index
    %c0_26 = arith.constant 0 : index
    %49 = vector.load %arg6[%c0_24, %c0_25, %c0_26] : memref<3x4x4xf32, #tpu.memory_space<vmem>>, vector<1x4x4xf32>
    %50 = vector.shape_cast %49 : vector<1x4x4xf32> to vector<4x4xf32>
    %51 = vector.extract_strided_slice %44 {offsets = [0, 0], sizes = [4, 128], strides = [1, 1]} : vector<4x134xf32> to vector<4x128xf32>
    %cst_27 = arith.constant dense<0.000000e+00> : vector<4x128xf32>
    %52 = tpu.matmul %50, %51, %cst_27 {dimension_numbers = #tpu.dot_dimension_numbers<[1], [0], [0], [1], [0, 0, 1, 1], [], []>} : vector<4x4xf32>, vector<4x128xf32>, vector<4x128xf32> -> vector<4x128xf32>
    %53 = arith.addf %48, %52 : vector<4x128xf32>
    %c1_28 = arith.constant 1 : index
    %c0_29 = arith.constant 0 : index
    %c0_30 = arith.constant 0 : index
    %54 = vector.load %arg6[%c1_28, %c0_29, %c0_30] : memref<3x4x4xf32, #tpu.memory_space<vmem>>, vector<1x4x4xf32>
    %55 = vector.shape_cast %54 : vector<1x4x4xf32> to vector<4x4xf32>
    %56 = vector.extract_strided_slice %44 {offsets = [0, 3], sizes = [4, 128], strides = [1, 1]} : vector<4x134xf32> to vector<4x128xf32>
    %cst_31 = arith.constant dense<0.000000e+00> : vector<4x128xf32>
    %57 = tpu.matmul %55, %56, %cst_31 {dimension_numbers = #tpu.dot_dimension_numbers<[1], [0], [0], [1], [0, 0, 1, 1], [], []>} : vector<4x4xf32>, vector<4x128xf32>, vector<4x128xf32> -> vector<4x128xf32>
    %58 = arith.addf %53, %57 : vector<4x128xf32>
    %c2_32 = arith.constant 2 : index
    %c0_33 = arith.constant 0 : index
    %c0_34 = arith.constant 0 : index
    %59 = vector.load %arg6[%c2_32, %c0_33, %c0_34] : memref<3x4x4xf32, #tpu.memory_space<vmem>>, vector<1x4x4xf32>
    %60 = vector.shape_cast %59 : vector<1x4x4xf32> to vector<4x4xf32>
    %61 = vector.extract_strided_slice %44 {offsets = [0, 6], sizes = [4, 128], strides = [1, 1]} : vector<4x134xf32> to vector<4x128xf32>
    %cst_35 = arith.constant dense<0.000000e+00> : vector<4x128xf32>
    %62 = tpu.matmul %60, %61, %cst_35 {dimension_numbers = #tpu.dot_dimension_numbers<[1], [0], [0], [1], [0, 0, 1, 1], [], []>} : vector<4x4xf32>, vector<4x128xf32>, vector<4x128xf32> -> vector<4x128xf32>
    %63 = arith.addf %58, %62 : vector<4x128xf32>
    %c0_36 = arith.constant 0 : index
    %c0_37 = arith.constant 0 : index
    %c0_38 = arith.constant 0 : index
    %64 = vector.load %arg8[%c0_36, %c0_37, %c0_38] : memref<1x4x128xf32, #tpu.memory_space<vmem>>, vector<1x4x128xf32>
    %65 = vector.shape_cast %64 : vector<1x4x128xf32> to vector<4x128xf32>
    %66 = vector.shape_cast %63 : vector<4x128xf32> to vector<1x4x128xf32>
    tpu.vector_store %arg8[%c0_36, %c0_37, %c0_38], %66 {strides = array<i32>} : memref<1x4x128xf32, #tpu.memory_space<vmem>>, vector<1x4x128xf32>,
    return
  }
  func.func @transform_0(%arg0: i32, %arg1: i32) -> (i32, i32, i32) {
    %c0_i32 = arith.constant 0 : i32
    %c0_i32_0 = arith.constant 0 : i32
    return %arg0, %c0_i32, %arg1 : i32, i32, i32
  }
  func.func @transform_1(%arg0: i32, %arg1: i32) -> (i32, i32, i32, i32) {
    %c0_i32 = arith.constant 0 : i32
    %c0_i32_0 = arith.constant 0 : i32
    %c0_i32_1 = arith.constant 0 : i32
    return %arg0, %arg1, %c0_i32, %c0_i32_0 : i32, i32, i32, i32
  }
  func.func @transform_2(%arg0: i32, %arg1: i32) -> (i32, i32, i32) {
    %c0_i32 = arith.constant 0 : i32
    %c0_i32_0 = arith.constant 0 : i32
    %c0_i32_1 = arith.constant 0 : i32
    %c0_i32_2 = arith.constant 0 : i32
    return %c0_i32, %c0_i32_0, %c0_i32_1 : i32, i32, i32
  }
  func.func @transform_3(%arg0: i32, %arg1: i32) -> (i32, i32) {
    %c0_i32 = arith.constant 0 : i32
    %c0_i32_0 = arith.constant 0 : i32
    %c0_i32_1 = arith.constant 0 : i32
    return %c0_i32, %c0_i32_0 : i32, i32
  }
  func.func @transform_4(%arg0: i32, %arg1: i32) -> (i32, i32, i32) {
    %c0_i32 = arith.constant 0 : i32
    %c0_i32_0 = arith.constant 0 : i32
    %c0_i32_1 = arith.constant 0 : i32
    %c0_i32_2 = arith.constant 0 : i32
    return %c0_i32, %c0_i32_0, %c0_i32_1 : i32, i32, i32
  }
  func.func @transform_5(%arg0: i32, %arg1: i32) -> (i32, i32) {
    %c0_i32 = arith.constant 0 : i32
    %c0_i32_0 = arith.constant 0 : i32
    %c0_i32_1 = arith.constant 0 : i32
    return %c0_i32, %c0_i32_0 : i32, i32
  }
  func.func @transform_6(%arg0: i32, %arg1: i32) -> (i32, i32, i32) {
    %c0_i32 = arith.constant 0 : i32
    %c0_i32_0 = arith.constant 0 : i32
    return %arg0, %c0_i32, %arg1 : i32, i32, i32
  }
}

</mosaic_0001>

<bundles_post_ra>
// kernel: tpu_custom_call.1
= control target key start
LH: loop header
LB: loop body
LE: loop exit
PB: predicated region body
PF: predicated region fallthrough
CT: control target
= control target key end

     0   :  { %s1768_s0 = inlined_call_operand.hbm [shape: f32[2,4,128], index: 0, kind: input, shape index: {}]   ;;  %s1769_s1 = inlined_call_operand.hbm [shape: f32[2,1,4,256], index: 1, kind: input, shape index: {}]   ;;  %s1770_s2 = inlined_call_operand.vmem [shape: f32[3,4,4], index: 2, kind: input, shape index: {}]   ;;  %s1771_s3 = inlined_call_operand.vmem [shape: f32[4,1], index: 3, kind: input, shape index: {}]   ;;  %s1772_s4 = inlined_call_operand.vmem [shape: f32[3,4,4], index: 4, kind: input, shape index: {}]   ;;  %s1773_s5 = inlined_call_operand.vmem [shape: f32[4,1], index: 5, kind: input, shape index: {}]   ;;  %s1774_s6 = inlined_call_operand.hbm [shape: f32[2,4,128], index: 6, kind: output, shape index: {}]  }
   0x1   :  { %1777 = sst [smem:[#allocation11_spill]] %s1768_s0 }
   0x2   :  { %11 = vsyncpa [#allocation3], 0 }
   0x3   :  { %13 = vsyncpa [#allocation3 + $0x1], 0 }
   0x4   :  { %14 = vsyncpa [#allocation6], 0 }
   0x5   :  { %16 = vsyncpa [#allocation6 + $0x1], 0 }
   0x6   :  { %17 = vsyncpa [#allocation4], 0 }
   0x7   :  { %19 = vsyncpa [#allocation4 + $0x1], 0  ;;  %s1452_s21 = smov 0   ;;  %s1454_s22 = smov 0  }
   0x8   :  { %s1456_s23 = smov 0   ;;  %s1458_s24 = smov 0  }
   0x9   :  { %s1460_s25 = smov 0   ;;  %s1462_s26 = smov 0  }
   0xa LB: > { %s1122_s27 = sadd.s32 4294967295, %s1404_s26   ;;  %s1123_s28 = sadd.s32 4294967294, %s1404_s26   ;;  %s1404_s26 = sphi %s1462_s26, %s25_s26   ;;  %s1400_s25 = sphi %s1460_s25, %s1796_s25   ;;  %s1396_s24 = sphi %s1458_s24, %s1795_s24   ;;  %s1392_s23 = sphi %s1456_s23, %s1794_s23   ;;  %s1388_s22 = sphi %s1454_s22, %s1793_s22   ;;  %s1384_s21 = sphi %s1452_s21, %s1792_s21  }
   0xb   : > { %s37_s29 = sadd.s32 1, %s1400_s25  ;;  %s46_s30 = sadd.s32 1, %s1392_s23 }
   0xc   : > { %p39_p0 = scmp.ge.s32.totalorder %s37_s29, 2  ;;  %p53_p1 = scmp.ne.s32.totalorder %s1392_s23, %s1388_s22 }
   0xd   : > { %p54_p2 = scmp.eq.s32.totalorder %s1404_s26, 0  ;;  %p59_p3 = scmp.ne.s32.totalorder %s1388_s22, %s1384_s21 }
   0xe   : > { %s1798_s29 = smov (%p39_p0, %s37_s29), 0  ;;  %p60_p5 = scmp.eq.s32.totalorder %s1122_s27, 0 }
   0xf   : > { %p1493_p4 = por %p54_p2, %p53_p1  ;;  %s41_s8 = ssub.s32 %s1400_s25, %s1798_s29 }
  0x10   : > { %p197_p6 = scmp.eq.s32.totalorder %s1122_s27, 1  ;;  %p44_p7 = scmp.eq.s32.totalorder %s41_s8, 0 }
  0x11   : > { %p1499_p8 = por %p60_p5, %p59_p3  ;;  %p203_p10 = scmp.eq.s32.totalorder %s1123_s28, 1 }
  0x12   : > { %p1503_p9 = por %p197_p6, %p53_p1  ;;  %p1197_p13 = scmp.lt.s32.totalorder %s1404_s26, 2 }
  0x13   : > { %s1779_s9 = scalar_select %p1499_p8, 1, 0 }
  0x14   : > { %s1780_s10 = scalar_select %p1503_p9, 1, 0 }
  0x15   : > { %s1508_s11 = scalar_select %p44_p7, %s1392_s23, %s46_s30  }
  0x16   : > { %p1510_p11 = por %p203_p10, %p59_p3  ;;  %s1517_s13 = sand.u32 1, %s1392_s23  }
  0x17   : > { %s1126_s14 = sshll.u32 %s1517_s13, 2  ;;  %s1127_s15 = sshll.u32 %s1400_s25, 6 }
  0x18   : > { %s1781_s12 = scalar_select %p1510_p11, 1, 0 }
  0x19   : > { %s1782_s0 = sld [smem:[#allocation11_spill]]  ;;  %s239_s19 = scalar_lea.vmem [#allocation2], %s1126_s14 }
  0x1a   : > { %s247_s20 = sshll.u32 %s239_s19, 4  ;;  %p1530_p0 = pnand %p1197_p13, %p1493_p4  ;;  %s1526_s20 = int_to_ptr.vmem [resolvable:$true] %s247_s20 }
  0x1b   : > { %s236_s28 = scalar_lea.sflag [#allocation3], %s1517_s13 }
  0x1c   : > { %p1260_p5 = pneg %p1530_p0 }
  0x1f   : > { %s1524_s18 = scalar_lea.hbm %s1782_s0, %s1127_s15  ;;  %s1263_s7 = scalar_lea.hbm %s1782_s0, 128 }
  0x20   : > { %s1258_s30 = scalar_lea.hbm %s1524_s18, 64  ;;  %p1264_p4 = scmp.lt.u32.totalorder %s1524_s18, %s1782_s0 }
  0x21   : > { %p1259_p3 = scmp.ne.s32.totalorder %s1524_s18, %s1258_s30  ;;  %p1265_p10 = scmp.lt.u32.totalorder %s1263_s7, %s1258_s30 }
  0x22   : > { %p1267_p12 = scmp.lt.u32.totalorder %s1258_s30, %s1524_s18 }
  0x23   : > { %p1261_p6 = pnand %p1260_p5, %p1259_p3  ;;  %p1266_p13 = por %p1265_p10, %p1264_p4 }
  0x25   : > { %p1262_p7 = pneg %p1261_p6  ;;  %p1268_p1 = por %p1267_p12, %p1266_p13 }
  0x27   : > { %p1269_p2 = pnand %p1268_p1, %p1262_p7 }
  0x29   : > { %1272 = shalt.err (!%p1269_p2)
}
  0x2a   : > { %s1273_s17 = scalar_lea.vmem %s1526_s20, 64  ;;  %s1406_s19 = smov [#allocation2]  }
  0x2b   : > { %p1274_p3 = scmp.ne.s32.totalorder %s1526_s20, %s1273_s17  ;;  %s1278_s8 = sshll.u32 %s1406_s19, 4  ;;  %s1279_s8 = int_to_ptr.vmem [resolvable:$false] %s1278_s8 }
  0x2c   : > { %s1280_s14 = scalar_lea.vmem %s1279_s8, 128  ;;  %p1281_p9 = scmp.lt.s32.totalorder %s1526_s20, %s1279_s8 }
  0x2d   : > { %p1276_p6 = pnand %p1274_p3, %p1260_p5  ;;  %p1282_p4 = scmp.lt.s32.totalorder %s1280_s14, %s1273_s17 }
  0x2f   : > { %p1277_p11 = pneg %p1276_p6  ;;  %p1283_p10 = por %p1282_p4, %p1281_p9 }
  0x31   : > { %p1284_p12 = pnand %p1283_p10, %p1277_p11 }
  0x33   : > { %1287 = shalt.err (!%p1284_p12)
}
  0x34   : > { %1189 = dma.hbm_to_vmem [thread:$0]  (!%p1530_p0), %s1524_s18, 64, %s1526_s20, %s236_s28  }
  0x35   : > { %p1784_p1 = scmp.lt.s32.totalorder %s1404_s26, 3  ;;  %p1785_p2 = scmp.ge.s32.totalorder %s1404_s26, 1 }
  0x36   : > { %s1128_s7 = sshll.u32 %s1517_s13, 3  ;;  %s1158_s15 = sshll.u32 %s1400_s25, 7 }
  0x37   : > { %p1566_p7 = pnand %p1785_p2, %p1784_p1  ;;  %s1575_s19 = scalar_lea.hbm %s1769_s1, %s1158_s15 }
  0x38   : > { %s258_s8 = scalar_lea.vmem [#allocation5], %s1128_s7  ;;  %s255_s18 = scalar_lea.sflag [#allocation6], %s1517_s13 }
  0x39   : > { %s1786_s30 = scalar_select %p1566_p7, 1, 0 }
  0x3a   : > { %s268_s14 = sshll.u32 %s258_s8, 4  ;;  %s1288_s20 = scalar_lea.hbm %s1575_s19, 128  ;;  %s269_s14 = int_to_ptr.vmem [resolvable:$true] %s268_s14 }
  0x3b   : > { %p1289_p9 = scmp.ne.s32.totalorder %s1575_s19, %s1288_s20  ;;  %s1293_s16 = scalar_lea.hbm %s1769_s1, 256 }
  0x3c   : > { %p1294_p3 = scmp.lt.u32.totalorder %s1575_s19, %s1769_s1  ;;  %p1295_p6 = scmp.lt.u32.totalorder %s1293_s16, %s1288_s20 }
  0x3d   : > { %p1291_p11 = pnand %p1289_p9, %p1260_p5  ;;  %p1297_p10 = scmp.lt.u32.totalorder %s1288_s20, %s1575_s19 }
  0x3e   : > { %p1296_p4 = por %p1295_p6, %p1294_p3 }
  0x3f   : > { %p1292_p13 = pneg %p1291_p11 }
  0x40   : > { %p1298_p12 = por %p1297_p10, %p1296_p4 }
  0x42   : > { %p1299_p1 = pnand %p1298_p12, %p1292_p13 }
  0x44   : > { %1302 = shalt.err (!%p1299_p1)
}
  0x45   : > { %s1303_s13 = scalar_lea.vmem %s269_s14, 128  ;;  %s1407_s7 = smov [#allocation5]  }
  0x46   : > { %p1304_p2 = scmp.ne.s32.totalorder %s269_s14, %s1303_s13  ;;  %s1308_s0 = sshll.u32 %s1407_s7, 4  ;;  %s1309_s0 = int_to_ptr.vmem [resolvable:$false] %s1308_s0 }
  0x47   : > { %s1310_s8 = scalar_lea.vmem %s1309_s0, 256  ;;  %p1311_p8 = scmp.lt.s32.totalorder %s269_s14, %s1309_s0 }
  0x48   : > { %p1306_p9 = pnand %p1304_p2, %p1260_p5  ;;  %p1312_p7 = scmp.lt.s32.totalorder %s1310_s8, %s1303_s13 }
  0x4a   : > { %p1307_p11 = pneg %p1306_p9  ;;  %p1313_p3 = por %p1312_p7, %p1311_p8 }
  0x4c   : > { %p1314_p6 = pnand %p1313_p3, %p1307_p11 }
  0x4e   : > { %1317 = shalt.err (!%p1314_p6)
}
  0x4f   : > { %1192 = dma.hbm_to_vmem [thread:$0]  (!%p1530_p0), %s1575_s19, 128, %s269_s14, %s255_s18  }
  0x50   : > { %p1787_p13 = scmp.ne.s32.totalorder %s1786_s30, 0 }
  0x51   : > { %s1600_s20 = sand.u32 (!%p1787_p13), 1, %s1388_s22   ;;  %p1788_p8 = scmp.ne.s32.totalorder (!%p1787_p13), %s1779_s9, 0 }
  0x52   : > { %277 = sbr.rel (%p1787_p13) target bundleno = 1262 (0x4ee), region = 44  ;;  %s1132_s28 = sshll.u32 (!%p1787_p13), %s1600_s20, 2 }
  0x53   : > { %s280_s16 = scalar_lea.sflag (!%p1787_p13), [#allocation3], %s1600_s20  ;;  %s283_s15 = scalar_lea.vmem (!%p1787_p13), [#allocation2], %s1132_s28 }
  0x59   : > { %1371 = dma.done.wait (%p1788_p8), %s280_s16, 64  }
  0x5a   : > { %1373 = vsyncadd (%p1788_p8), %s280_s16, 4294967232  ;;  %s1133_s27 = sshll.u32 %s1600_s20, 3  ;;  %s289_s30 = scalar_lea.sflag [#allocation6], %s1600_s20 }
  0x5b   : > { %s292_s19 = scalar_lea.vmem [#allocation5], %s1133_s27 }
  0x5c   : > { %1375 = dma.done.wait (%p1788_p8), %s289_s30, 128  }
  0x5d   : > { %1377 = vsyncadd (%p1788_p8), %s289_s30, 4294967168  ;;  %v1616_v0 = vld [vmem:[%s283_s15] sm:$0xf]  ;;  %v1618_v1 = vld [vmem:[%s292_s19] sm:$0xff]  ;;  %v1408_v4 = vmov 0.0   ;;  %s1409_s9 = smov 4   ;;  %v670_v54 = vlaneseq }
  0x5e   : > { %vm332_vm0 = vcmp.ge.f32.partialorder %v1616_v0, 0.0  ;;  %v335_v2 = vmul.f32 0.1, %v1616_v0  ;;  %vm331_vm1 = vcmp.ge.f32.partialorder %v1618_v1, 0.0  ;;  %v334_v3 = vmul.f32 0.1, %v1618_v1  ;;  %434 = vmatprep.mubr.f32.mxu0 %v1408_v4  ;;  %537 = vmatprep.mubr.f32.mxu1 %v1408_v4 }
  0x5f   : > { %v329_v5 = vcombine.high %v1618_v1, %v1618_v1  ;;  %s1410_s14 = smov 2   ;;  %s1411_s18 = smov 3   ;;  %v1412_v10 = vmov 0   ;;  %v340_v11 = vld [vmem:[%s1771_s3] sm:$0xf]  ;;  %vm359_vm3 = vcmask 31744  }
  0x60   : > { %v338_v6 = vsel %vm332_vm0, %v1616_v0, %v335_v2  ;;  %v337_v7 = vsel %vm331_vm1, %v1618_v1, %v334_v3  ;;  %1255 = vset.pattern.permute.xlu1 %v1412_v10  ;;  %1256 = vset.pattern.permute.xlu0 %v1412_v10  ;;  %vm365_vm4 = vcmask 1043456   ;;  %v349_v19 = vld [vmem:[%s1770_s2] sm:$0xf]  ;;  %vm565_vm5 = vcmask 15360   ;;  %v1138_v25 = vld [vmem:[%s1770_s2 + $0x4] sm:$0xf] }
  0x61   : > { %355 = vrot.lane.b32.xlu0 %v338_v6, %s1409_s9  ;;  %353 = vrot.lane.b32.xlu1 %v337_v7, %s1409_s9  ;;  %v336_v8 = vmul.f32 0.1, %v329_v5  ;;  %vm333_vm2 = vcmp.ge.f32.partialorder %v329_v5, 0.0  ;;  %vm463_vm6 = vcmask 23552   ;;  %v1142_v28 = vld [vmem:[%s1770_s2 + $0x8] sm:$0xf] }
  0x62   : > { %s1413_s30 = smov 125   ;;  %vm447_vm7 = vcmask 1022976   ;;  %vm1414_vm8 = vmmov 0   ;;  %s1415_s19 = smov 122   ;;  %v671_v55 = vand.u32 127, %v670_v54  ;;  %vm909_vm13 = vcmask 998400  }
  0x63   : > { %v339_v9 = vsel %vm333_vm2, %v329_v5, %v336_v8  ;;  %v731_v62 = vld [vmem:[%s1772_s4] sm:$0xf]  ;;  %v1148_v3 = vld [vmem:[%s1772_s4 + $0x4] sm:$0xf]  ;;  %s325_s15 = scalar_lea.vmem [#allocation7], %s1132_s28  ;;  %p1789_p5 = scmp.ne.s32.totalorder %s1780_s10, 0 }
  0x64   : > { %v674_v56 = vadd.s32 4294967293, %v671_v55  ;;  %s1016_s27 = sshll.u32 %s325_s15, 4  ;;  %s1416_s28 = smov [#allocation7]   ;;  %s1720_s27 = int_to_ptr.vmem [resolvable:$true] %s1016_s27 }
  0x65   : > { %561 = vrot.lane.b32.xlu0 %v338_v6, %s1410_s14  ;;  %459 = vrot.lane.b32.xlu1 %v338_v6, %s1411_s18  ;;  %s1322_s17 = sshll.u32 %s1416_s28, 4  ;;  %s1323_s17 = int_to_ptr.vmem [resolvable:$false] %s1322_s17 }
  0x66   : > { %vm676_vm9 = vcmp.ge.s32.totalorder %v674_v56, 0  ;;  %vm678_vm10 = vcmp.lt.s32.totalorder %v674_v56, 16  ;;  %s1324_s13 = scalar_lea.vmem %s1323_s17, 128  ;;  %p1325_p10 = scmp.lt.s32.totalorder %s1720_s27, %s1323_s17 }
  0x67   : > { %vm680_vm11 = vmand %vm676_vm9, %vm678_vm10 }
  0x69   : > { %457 = vrot.lane.b32.xlu1 %v337_v7, %s1411_s18  ;;  %357 = vrot.lane.b32.xlu0 %v339_v9, %s1409_s9 }
  0x6d   : > { %563 = vrot.lane.b32.xlu1 %v339_v9, %s1410_s14  ;;  %461 = vrot.lane.b32.xlu0 %v339_v9, %s1411_s18 }
  0x71   : > { %559 = vrot.lane.b32.xlu0 %v337_v7, %s1410_s14  ;;  %343 = vperm.xlu1 %1255, %v340_v11   ;;  %v1151_v7 = vld [vmem:[%s1772_s4 + $0x8] sm:$0xf] }
  0xd3   : > { %v356_v12 = vpop.permute.xlu0 %355  ;;  %v354_v13 = vpop.permute.xlu1 %353 }
  0xd4   : > { %v360_v20 = vsel %vm359_vm3, %v354_v13, %v356_v12 }
  0xd7   : > { %v562_v14 = vpop.permute.xlu0 %561  ;;  %v460_v15 = vpop.permute.xlu1 %459 }
  0xdb   : > { %v458_v16 = vpop.permute.xlu1 %457  ;;  %v358_v17 = vpop.permute.xlu0 %357 }
  0xdc   : > { %v361_v18 = vsel %vm359_vm3, %v356_v12, %v358_v17  ;;  %v464_v26 = vsel %vm463_vm6, %v458_v16, %v460_v15 }
  0xdd   : > { %1135 = vmatprep.subr.msk.mxu0 %vm365_vm4, %v361_v18 }
  0xde   : > { %1136 = vmatpush1.msk.msra.mxu0 %vm365_vm4, %v360_v20 }
  0xdf   : > { %v564_v21 = vpop.permute.xlu1 %563  ;;  %1137 = vmatmul.mubr.msk.f32.vlgmr.msra.gmra.mrb[0].mxu0 %vm359_vm3, %v349_v19  ;;  %v462_v22 = vpop.permute.xlu0 %461 }
  0xe0   : > { %v567_v23 = vsel %vm565_vm5, %v562_v14, %v564_v21  ;;  %v465_v24 = vsel %vm463_vm6, %v460_v15, %v462_v22  ;;  %639 = vmatprep.mubr.f32.mxu0 %v1408_v4 }
  0xe1   : > { %1139 = vmatprep.subr.msk.mxu1 %vm365_vm4, %v465_v24  ;;  %1143 = vmatprep.subr.msk.mxu0 %vm365_vm4, %v567_v23 }
  0xe2   : > { %1140 = vmatpush1.msk.msra.mxu1 %vm365_vm4, %v464_v26 }
  0xe3   : > { %1141 = vmatmul.mubr.msk.f32.vlgmr.msra.gmra.mrb[0].mxu1 %vm359_vm3, %v1138_v25  ;;  %v560_v27 = vpop.permute.xlu0 %559  ;;  %1165 = vmatprep.subr.mxu1 %v1408_v4 }
  0xe4   : > { %v566_v29 = vsel %vm565_vm5, %v560_v27, %v562_v14  ;;  %1167 = vmatprep.mubr.msk.f32.mxu1 %vm1414_vm8, %v1408_v4 }
  0xe5   : > { %1144 = vmatpush1.msk.msra.mxu0 %vm365_vm4, %v566_v29 }
  0xe6   : > { %1145 = vmatmul.mubr.msk.f32.vlgmr.msra.gmra.mrb[2].mxu0 %vm359_vm3, %v1142_v28  ;;  %1170 = vmatprep.subr.mxu0 %v1408_v4 }
  0xe7   : > { %1172 = vmatprep.mubr.msk.f32.mxu0 %vm1414_vm8, %v1408_v4 }
  0xf0   : > { %v344_v36 = vpop.permute.xlu1 %343 }
  0xf1   : > { %v346_v38 = vadd.f32 %v344_v36, %v1618_v1  ;;  %v347_v42 = vadd.f32 %v344_v36, %v1616_v0  ;;  %v723_v0 = vld [vmem:[%s1773_s5] sm:$0xf] }
 0x1b2   : > { %v436_v30 = vpop.f32.mrb[0].mxu0 }
 0x1b3   : > { %443 = vrot.lane.b32.xlu0 %v436_v30, %s1413_s30  ;;  %v438_v31 = vpop.f32.mrb[1].mxu0 }
 0x1b4   : > { %445 = vrot.lane.b32.xlu1 %v438_v31, %s1413_s30 }
 0x1b6   : > { %v539_v32 = vpop.f32.mrb[0].mxu1 }
 0x1b7   : > { %546 = vrot.lane.b32.xlu0 %v539_v32, %s1413_s30  ;;  %v541_v33 = vpop.f32.mrb[1].mxu1 }
 0x1b8   : > { %548 = vrot.lane.b32.xlu1 %v541_v33, %s1413_s30 }
 0x1b9   : > { %v641_v34 = vpop.f32.mrb[2].mxu0 }
 0x1ba   : > { %v643_v35 = vpop.f32.mrb[3].mxu0 }
 0x1bb   : > { %648 = vrot.lane.b32.xlu0 %v641_v34, %s1413_s30 }
 0x1bc   : > { %650 = vrot.lane.b32.xlu1 %v643_v35, %s1413_s30 }
 0x225   : > { %v444_v37 = vpop.permute.xlu0 %443 }
 0x226   : > { %v446_v39 = vpop.permute.xlu1 %445  ;;  %v452_v43 = vadd.f32 %v444_v37, %v346_v38 }
 0x227   : > { %v448_v40 = vsel %vm447_vm7, %v444_v37, %v446_v39 }
 0x228   : > { %v453_v46 = vadd.f32 %v448_v40, %v347_v42 }
 0x229   : > { %v547_v41 = vpop.permute.xlu0 %546 }
 0x22a   : > { %v549_v44 = vpop.permute.xlu1 %548  ;;  %v554_v47 = vadd.f32 %v547_v41, %v452_v43 }
 0x22b   : > { %v550_v45 = vsel %vm447_vm7, %v547_v41, %v549_v44 }
 0x22c   : > { %v555_v49 = vadd.f32 %v550_v45, %v453_v46 }
 0x22d   : > { %v649_v48 = vpop.permute.xlu0 %648 }
 0x22e   : > { %v656_v50 = vadd.f32 %v649_v48, %v554_v47  ;;  %v651_v51 = vpop.permute.xlu1 %650 }
 0x22f   : > { %v652_v52 = vsel %vm447_vm7, %v649_v48, %v651_v51 }
 0x230   : > { %v657_v53 = vadd.f32 %v652_v52, %v555_v49  ;;  %685 = vrot.lane.b32.xlu0 %v656_v50, %s1411_s18 }
 0x232   : > { %687 = vrot.lane.b32.xlu1 %v657_v53, %s1411_s18 }
 0x236   : > { %819 = vrot.lane.b32.xlu1 %v1408_v4, %s1413_s30 }
 0x23a   : > { %907 = vrot.lane.b32.xlu1 %v1408_v4, %s1415_s19 }
 0x2a2   : > { %v686_v57 = vpop.permute.xlu0 %685 }
 0x2a4   : > { %v688_v58 = vpop.permute.xlu1 %687 }
 0x2a5   : > { %v691_v59 = vsel %vm463_vm6, %v686_v57, %v688_v58 }
 0x2a6   : > { %v695_v60 = vsel %vm680_vm11, %v691_v59, 0.0 }
 0x2a7   : > { %vm717_vm12 = vcmp.ge.f32.partialorder %v695_v60, 0.0  ;;  %v719_v61 = vmul.f32 0.1, %v695_v60 }
 0x2a8   : > { %v820_v1 = vpop.permute.xlu1 %819 }
 0x2a9   : > { %v721_v63 = vsel %vm717_vm12, %v695_v60, %v719_v61 }
 0x2aa   : > { %817 = vrot.lane.b32.xlu0 %v721_v63, %s1413_s30  ;;  %1166 = vmatpush3.msk.msra.mxu1 %vm365_vm4, %v721_v63 }
 0x2ab   : > { %1168 = vmatmul.mubr.msk.f32.vlgmr.msra.gmra.mrb[2].mxu1 %vm359_vm3, %v731_v62  ;;  %1175 = vmatprep.subr.mxu1 %v1408_v4 }
 0x2ac   : > { %1177 = vmatprep.mubr.msk.f32.mxu1 %vm1414_vm8, %v1408_v4  ;;  %v908_v6 = vpop.permute.xlu1 %907 }
 0x2ae   : > { %905 = vrot.lane.b32.xlu0 %v721_v63, %s1415_s19 }
 0x2b2   : > { %726 = vperm.xlu0 %1256, %v723_v0  }
 0x31c   : > { %v818_v2 = vpop.permute.xlu0 %817 }
 0x31d   : > { %v821_v5 = vsel %vm447_vm7, %v818_v2, %v820_v1 }
 0x31e   : > { %1171 = vmatpush3.msk.msra.mxu0 %vm365_vm4, %v821_v5 }
 0x31f   : > { %1173 = vmatmul.mubr.msk.f32.vlgmr.msra.gmra.mrb[4].mxu0 %vm359_vm3, %v1148_v3 }
 0x320   : > { %v906_v4 = vpop.permute.xlu0 %905 }
 0x321   : > { %v910_v8 = vsel %vm909_vm13, %v906_v4, %v908_v6 }
 0x322   : > { %1176 = vmatpush3.msk.msra.mxu1 %vm365_vm4, %v910_v8 }
 0x323   : > { %1178 = vmatmul.mubr.msk.f32.vlgmr.msra.gmra.mrb[4].mxu1 %vm359_vm3, %v1151_v7 }
 0x331   : > { %v727_v15 = vpop.permute.xlu0 %726 }
 0x332   : > { %v729_v17 = vadd.f32 %v727_v15, %v695_v60 }
 0x37e   : > { %v804_v9 = vpop.f32.mrb[2].mxu1 }
 0x37f   : > { %809 = vrot.lane.b32.xlu1 %v804_v9, %s1411_s18  ;;  %v1169_v10 = vpop.f32.mrb[3].mxu1 }
 0x3f1   : > { %v810_v16 = vpop.permute.xlu1 %809 }
 0x3f2   : > { %v893_v11 = vpop.f32.mrb[4].mxu0  ;;  %v813_v18 = vadd.f32 %v810_v16, %v727_v15  ;;  %v812_v20 = vadd.f32 %v810_v16, %v729_v17 }
 0x3f3   : > { %898 = vrot.lane.b32.xlu1 %v893_v11, %s1411_s18  ;;  %v1174_v12 = vpop.f32.mrb[5].mxu0 }
 0x3f6   : > { %v982_v13 = vpop.f32.mrb[4].mxu1 }
 0x3f7   : > { %987 = vrot.lane.b32.xlu0 %v982_v13, %s1411_s18  ;;  %v1179_v14 = vpop.f32.mrb[5].mxu1  ;;  %s1155_s18 = sshll.u32 %s1396_s24, 6  ;;  %s1318_s24 = scalar_lea.vmem %s1720_s27, 64 }
 0x3f8   : > { %s1718_s14 = scalar_lea.hbm %s1774_s6, %s1155_s18  ;;  %p1319_p0 = scmp.ne.s32.totalorder %s1720_s27, %s1318_s24 }
 0x3f9   : > { %p1326_p12 = scmp.lt.s32.totalorder %s1324_s13, %s1318_s24 }
 0x3fa   : > { %p1320_p7 = pnand %p1319_p0, %p1789_p5 }
 0x3fb   : > { %p1327_p1 = por %p1326_p12, %p1325_p10 }
 0x3fc   : > { %p1321_p4 = pneg %p1320_p7 }
 0x3fe   : > { %p1328_p2 = pnand %p1327_p1, %p1321_p4 }
 0x465   : > { %v899_v19 = vpop.permute.xlu1 %898 }
 0x466   : > { %v901_v21 = vadd.f32 %v899_v19, %v812_v20  ;;  %v902_v22 = vadd.f32 %v899_v19, %v813_v18 }
 0x469   : > { %v988_v23 = vpop.permute.xlu0 %987 }
 0x46a   : > { %v990_v24 = vadd.f32 %v988_v23, %v901_v21  ;;  %v991_v25 = vadd.f32 %v988_v23, %v902_v22 }
 0x46c   : > { %996 = vrot.lane.b32.xlu0 %v991_v25, %s1413_s30  ;;  %994 = vrot.lane.b32.xlu1 %v990_v24, %s1413_s30  ;;  %s1002_s30 = scalar_lea.sflag [#allocation4], %s1600_s20 }
 0x4de   : > { %v997_v26 = vpop.permute.xlu0 %996  ;;  %v995_v27 = vpop.permute.xlu1 %994 }
 0x4df   : > { %v998_v28 = vsel %vm447_vm7, %v995_v27, %v997_v26 }
 0x4e0   : > { %1000 = vst [vmem:[%s325_s15] sm:$0xf] %v998_v28 }
 0x4e1   : > { %1331 = shalt.err (!%p1328_p2)
}
 0x4e2   : > { %s1332_s20 = scalar_lea.hbm %s1718_s14, 64  ;;  %s1336_s8 = scalar_lea.hbm %s1774_s6, 128 }
 0x4e3   : > { %p1333_p9 = scmp.ne.s32.totalorder %s1718_s14, %s1332_s20  ;;  %p1337_p6 = scmp.lt.u32.totalorder %s1718_s14, %s1774_s6 }
 0x4e4   : > { %p1338_p13 = scmp.lt.u32.totalorder %s1336_s8, %s1332_s20  ;;  %p1340_p0 = scmp.lt.u32.totalorder %s1332_s20, %s1718_s14 }
 0x4e5   : > { %p1334_p11 = pnand %p1333_p9, %p1789_p5 }
 0x4e6   : > { %p1339_p8 = por %p1338_p13, %p1337_p6 }
 0x4e7   : > { %p1335_p3 = pneg %p1334_p11 }
 0x4e8   : > { %p1341_p7 = por %p1340_p0, %p1339_p8 }
 0x4ea   : > { %p1342_p4 = pnand %p1341_p7, %p1335_p3 }
 0x4ec   : > { %1345 = shalt.err (!%p1342_p4)
}
 0x4ed   : > { %1184 = dma.vmem_to_hbm [thread:$0]  (%p1789_p5), %s1720_s27, 64, %s1718_s14, %s1002_s30  }
 0x4ee PF: > { %s1028_s15 = sand.u32 1, %s1384_s21   ;;  %p1790_p10 = scmp.ne.s32.totalorder %s1781_s12, 0 }
 0x4ef   : > { %p1791_p12 = scmp.ge.s32.totalorder %s1404_s26, 2  ;;  %s1029_s19 = scalar_lea.sflag [#allocation4], %s1028_s15 }
 0x4f1   : > { %p1194_p1 = pnand %p1791_p12, %p1790_p10 }
 0x4f3   : > { %1379 = dma.done.wait (!%p1194_p1), %s1029_s19, 64  }
 0x4f4   : > { %1381 = vsyncadd (!%p1194_p1), %s1029_s19, 4294967232  ;;  %s25_s26 = sadd.s32 1, %s1404_s26   ;;  %s1792_s21 = smov %s1388_s22 }
 0x4f5   : > { %p22_p2 = scmp.ge.s32.totalorder %s25_s26, 4   ;;  %s1793_s22 = smov %s1392_s23 }
 0x4f6   : > { %s1794_s23 = smov %s1508_s11  ;;  %s1795_s24 = smov %s1400_s25 }
 0x4f7   : > { %s1796_s25 = smov %s1798_s29  ;;  %24 = sbr.rel (!%p22_p2) target bundleno = 10 (0xa), region = 114 }
 0x4fe   :  { %1034 = vsyncpa [#allocation3], 1 }
 0x4ff   :  { %1036 = vsyncpa [#allocation3 + $0x1], 1 }
 0x500   :  { %1037 = vsyncpa [#allocation6], 1 }
 0x501   :  { %1039 = vsyncpa [#allocation6 + $0x1], 1 }
 0x502   :  { %1040 = vsyncpa [#allocation4], 1 }
 0x503   :  { %1042 = vsyncpa [#allocation4 + $0x1], 1 }

</bundles_post_ra>
